<compile_context>
chip_gen: v5e
topology: v5e:2x2
jax: 0.10.0
libtpu: 0.0.40
codegen_flags: <defaults>
</compile_context>

<pallas_src>
import functools

import jax
import jax.numpy as jnp
import numpy as np
from jax.experimental import pallas as pl
from jax.experimental.pallas import tpu as pltpu


# ---------------------------------------------------------------------------
# Kernel body
# ---------------------------------------------------------------------------
def _codebook_attn_kernel(x_ref, kvt_ref, kv_ref, o_ref):
    # x_ref  : (TN, L)  io dtype   -- streamed token tile
    # kvt_ref: (L, C)   io dtype   -- resident codebook^T, pre-scaled by 1/sqrt(L)
    # kv_ref : (C, L)   io dtype   -- resident codebook (values)
    # o_ref  : (TN, L)  io dtype
    x = x_ref[...]
    kvt = kvt_ref[...]
    kv = kv_ref[...]

    # energy = x @ (kv^T / sqrt(L))  -- MXU, f32 accumulate.  No in-kernel
    # transpose (kv^T was materialized once in the wrapper) and no per-step
    # VPU scale (folded into kvt).
    energy = jnp.dot(x, kvt, preferred_element_type=jnp.float32)     # (TN, C)

    # Numerically-stable softmax over the codebook axis, all in f32.
    # Denominator reciprocal goes to the EUP slot (free while mem-bound).
    m = jnp.max(energy, axis=-1, keepdims=True)
    e = jnp.exp(energy - m)
    attn = e * pl.reciprocal(jnp.sum(e, axis=-1, keepdims=True), approx=True)

    # out = attention @ v  -- MXU, f32 accumulate (attn cast to the codebook
    # dtype only as a matmul operand; elementwise math stayed in f32, so the
    # bf16 path never hits the VPU/EUP with bf16 — important on v5e).
    out = jnp.dot(attn.astype(kv.dtype), kv, preferred_element_type=jnp.float32)
    o_ref[...] = out.astype(o_ref.dtype)


# ---------------------------------------------------------------------------
# Tile-size selection (VMEM-budget driven)
# ---------------------------------------------------------------------------
_VMEM_TARGET = 24 * 2**20   # conservative: fits v7x's 32 MiB scoped default


def _pick_tile_n(N, L, C, itemsize, B):
    """Pick the token-tile size TN.

    Budget: 2x double-buffered (TN, L) tiles for x and out, the two resident
    codebook copies, and ~f32 softmax temporaries, all kept under
    _VMEM_TARGET.  Rounds to 256 (MXU-friendly) for large tiles, to the
    sublane (8 f32 / 16 bf16) for small ones, prefers divisors of N, and
    guarantees >= 2 parallel grid units when B == 1 (v7x has 2 TCs/chip).
    """
    sub = 16 if itemsize == 2 else 8
    per_row = 4 * L * itemsize + 3 * C * 4          # x+out (2x dbl-buf) + temps
    resident = 2 * C * L * max(itemsize, 4)         # kv + kv_t
    budget = max(_VMEM_TARGET - resident, 2 * 2**20)
    tn_cap = max(sub, int(budget // per_row))

    tn = min(N, tn_cap)
    if tn < N:
        if tn >= 256:
            tn = (tn // 256) * 256
        else:
            tn = max(sub, (tn // sub) * sub)
        # Prefer a tile that divides N: avoids padded remainder rows (wasted
        # exp() work on garbage rows that are masked on store anyway).
        if N % tn:
            for cand in range(tn, sub - 1, -sub):
                if N % cand == 0:
                    tn = cand
                    break

    # v7x megacore: make sure there are at least 2 parallel grid units/chip.
    if B * pl.cdiv(N, tn) < 2 and N >= 2 * sub:
        half = ((N // 2 + sub - 1) // sub) * sub
        tn = min(half, N)
    return int(tn)


# ---------------------------------------------------------------------------
# Wrapper
# ---------------------------------------------------------------------------
def codebook_attention(x, to_k_v, *, tile_n=None, io_dtype=None):
    """x: (B, N, L), to_k_v: (1, C, L) -> (B, N, L).

    io_dtype: optional streaming dtype (e.g. jnp.bfloat16).  Softmax and all
    matmul accumulation stay in f32 regardless.  Output is in io_dtype
    (defaults to x.dtype, i.e. exact module semantics).
    """
    B, N, L = x.shape
    _, C, L2 = to_k_v.shape
    assert L == L2, "last dim of x must equal codebook length"

    io_dtype = jnp.dtype(io_dtype) if io_dtype is not None else x.dtype
    inv_scale = float(1.0 / np.sqrt(np.float64(L)))

    x_io = x.astype(io_dtype)
    kv_io = to_k_v.astype(io_dtype)
    # Pre-transposed + pre-scaled codebook copy.  Computed once per call on a
    # tiny loop-invariant array (NOT a pre-scale of the streamed input).
    kvt_io = (jnp.swapaxes(to_k_v, -2, -1).astype(jnp.float32)
              * inv_scale).astype(io_dtype)

    itemsize = io_dtype.itemsize
    tn = tile_n if tile_n is not None else _pick_tile_n(N, L, C, itemsize, B)
    n_tiles = pl.cdiv(N, tn)

    # Explicit scoped-VMEM budget: double-buffered x/out tiles + resident
    # codebook copies + f32 softmax temporaries, with 2x headroom, clamped so
    # it is safe on v7x (64 MiB physical) and raises v5e's 16 MiB default.
    est = (2 * 2 * tn * L * itemsize          # x + out tiles, double-buffered
           + 2 * C * L * itemsize             # kv + kv_t resident
           + 4 * tn * C * 4)                  # softmax temporaries (f32)
    vmem_limit = int(min(40 * 2**20, max(16 * 2**20, 2 * est)))

    return pl.pallas_call(
        _codebook_attn_kernel,
        out_shape=jax.ShapeDtypeStruct((B, N, L), io_dtype),
        grid_spec=pltpu.PrefetchScalarGridSpec(
            num_scalar_prefetch=0,
            grid=(B, n_tiles),
            in_specs=[
                # x: one (TN, L) token tile per step (batch dim squeezed)
                pl.BlockSpec((None, tn, L), lambda b, n: (b, n, 0)),
                # codebook^T (pre-scaled): constant block -> fetched once
                pl.BlockSpec((None, L, C), lambda b, n: (0, 0, 0)),
                # codebook (values): constant block -> fetched once
                pl.BlockSpec((None, C, L), lambda b, n: (0, 0, 0)),
            ],
            out_specs=pl.BlockSpec((None, tn, L), lambda b, n: (b, n, 0)),
        ),
        compiler_params=pltpu.CompilerParams(
            # both axes independent -> megacore sharding on v7x (2 TCs/chip)
            dimension_semantics=("parallel", "parallel"),
            vmem_limit_bytes=vmem_limit,
        ),
    )(x_io, kvt_io, kv_io)


# ---------------------------------------------------------------------------
# Reference + tests
# ---------------------------------------------------------------------------
def _reference(x, to_k_v):
    L = x.shape[-1]
    scale = jnp.sqrt(jnp.float32(L))
    energy = jnp.matmul(x, jnp.swapaxes(to_k_v, -2, -1)) / scale
    attn = jax.nn.softmax(energy, axis=-1)
    return jnp.matmul(attn, to_k_v)


def _run_case(key, B, N, C, L, io_dtype=None, rtol=2e-3, atol=2e-3):
    kx, kw = jax.random.split(key)
    x = jax.random.normal(kx, (B, N, L), dtype=jnp.float32)
    to_k_v = jax.random.uniform(kw, (1, C, L), dtype=jnp.float32)  # torch.rand

    out = jax.block_until_ready(codebook_attention(x, to_k_v, io_dtype=io_dtype))

    if io_dtype is not None:
        # Compare against the reference evaluated on the same rounded inputs.
        ref = _reference(x.astype(io_dtype).astype(jnp.float32),
                         to_k_v.astype(io_dtype).astype(jnp.float32))
    else:
        ref = _reference(x, to_k_v)
    np.testing.assert_allclose(np.asarray(out, dtype=np.float32),
                               np.asarray(ref), rtol=rtol, atol=atol)


if __name__ == "__main__":
    key = jax.random.PRNGKey(0)
    k1, k2, k3, k4 = jax.random.split(key, 4)

    # Small shapes matching the module signature: batch=2, tokens=16,
    # channel(codebook)=8, length=32.
    _run_case(k1, B=2, N=16, C=8, L=32)

    # Larger lane-aligned shape exercising the streamed/pipelined path.
    _run_case(k2, B=2, N=1024, C=128, L=256)

    # B=1 with non-multiple-of-(8,128) C / L: exercises the >=2-grid-units
    # split (v7x megacore) and full-array blocks on the C / L dims.
    _run_case(k3, B=1, N=16, C=10, L=200)

    # bf16 I/O path (f32 softmax / accumulation inside the kernel).
    _run_case(k4, B=2, N=1024, C=128, L=256,
              io_dtype=jnp.bfloat16, rtol=5e-2, atol=5e-2)

    print("KERNEL_OK")
</pallas_src>

<mosaic_0001>
module attributes {stable_mosaic.version = 11 : i64} {
  func.func @_codebook_attn_kernel(%arg0: i32, %arg1: i32, %arg2: memref<1x16x32xf32, #tpu.memory_space<vmem>>, %arg3: memref<1x32x8xf32, #tpu.memory_space<vmem>>, %arg4: memref<1x8x32xf32, #tpu.memory_space<vmem>>, %arg5: memref<1x16x32xf32, #tpu.memory_space<vmem>>) attributes {dimension_semantics = [#tpu.dimension_semantics<parallel>, #tpu.dimension_semantics<parallel>], iteration_bounds = array<i64: 2, 1>, scalar_prefetch = 0 : i64, scratch_operands = 0 : i64, tpu.core_type = #tpu.core_type<tc>, window_params = [{transform_indices = @transform_0, window_bounds = array<i64: 1, 16, 32>}, {pipeline_mode = #tpu.pipeline_mode<synchronous>, transform_indices = @transform_1, window_bounds = array<i64: 1, 32, 8>}, {pipeline_mode = #tpu.pipeline_mode<synchronous>, transform_indices = @transform_2, window_bounds = array<i64: 1, 8, 32>}, {transform_indices = @transform_3, window_bounds = array<i64: 1, 16, 32>}]} {
    %c0 = arith.constant 0 : index
    %c0_0 = arith.constant 0 : index
    %c0_1 = arith.constant 0 : index
    %0 = vector.load %arg2[%c0, %c0_0, %c0_1] : memref<1x16x32xf32, #tpu.memory_space<vmem>>, vector<1x16x32xf32>
    %1 = vector.shape_cast %0 : vector<1x16x32xf32> to vector<16x32xf32>
    %c0_2 = arith.constant 0 : index
    %c0_3 = arith.constant 0 : index
    %c0_4 = arith.constant 0 : index
    %2 = vector.load %arg3[%c0_2, %c0_3, %c0_4] : memref<1x32x8xf32, #tpu.memory_space<vmem>>, vector<1x32x8xf32>
    %3 = vector.shape_cast %2 : vector<1x32x8xf32> to vector<32x8xf32>
    %c0_5 = arith.constant 0 : index
    %c0_6 = arith.constant 0 : index
    %c0_7 = arith.constant 0 : index
    %4 = vector.load %arg4[%c0_5, %c0_6, %c0_7] : memref<1x8x32xf32, #tpu.memory_space<vmem>>, vector<1x8x32xf32>
    %5 = vector.shape_cast %4 : vector<1x8x32xf32> to vector<8x32xf32>
    %cst = arith.constant dense<0.000000e+00> : vector<16x8xf32>
    %6 = tpu.matmul %1, %3, %cst {dimension_numbers = #tpu.dot_dimension_numbers<[1], [0], [0], [1], [0, 0, 1, 1], [], []>} : vector<16x32xf32>, vector<32x8xf32>, vector<16x8xf32> -> vector<16x8xf32>
    %cst_8 = arith.constant dense<0xFF800000> : vector<16xf32>
    %7 = vector.multi_reduction <maximumf>, %6, %cst_8 [1] : vector<16x8xf32> to vector<16xf32>
    %8 = vector.shape_cast %7 : vector<16xf32> to vector<16x1xf32>
    %9 = vector.broadcast %8 : vector<16x1xf32> to vector<16x8xf32>
    %10 = arith.subf %6, %9 : vector<16x8xf32>
    %11 = math.exp %10 : vector<16x8xf32>
    %cst_9 = arith.constant dense<0.000000e+00> : vector<16xf32>
    %12 = vector.multi_reduction <add>, %11, %cst_9 [1] : vector<16x8xf32> to vector<16xf32>
    %13 = vector.shape_cast %12 : vector<16xf32> to vector<16x1xf32>
    %14 = tpu.reciprocal %13 {approx = true} : vector<16x1xf32> -> vector<16x1xf32>
    %15 = vector.broadcast %14 : vector<16x1xf32> to vector<16x8xf32>
    %16 = arith.mulf %11, %15 : vector<16x8xf32>
    %cst_10 = arith.constant dense<0.000000e+00> : vector<16x32xf32>
    %17 = tpu.matmul %16, %5, %cst_10 {dimension_numbers = #tpu.dot_dimension_numbers<[1], [0], [0], [1], [0, 0, 1, 1], [], []>} : vector<16x8xf32>, vector<8x32xf32>, vector<16x32xf32> -> vector<16x32xf32>
    %c0_11 = arith.constant 0 : index
    %c0_12 = arith.constant 0 : index
    %c0_13 = arith.constant 0 : index
    %18 = vector.load %arg5[%c0_11, %c0_12, %c0_13] : memref<1x16x32xf32, #tpu.memory_space<vmem>>, vector<1x16x32xf32>
    %19 = vector.shape_cast %18 : vector<1x16x32xf32> to vector<16x32xf32>
    %20 = vector.shape_cast %17 : vector<16x32xf32> to vector<1x16x32xf32>
    tpu.vector_store %arg5[%c0_11, %c0_12, %c0_13], %20 {strides = array<i32>} : memref<1x16x32xf32, #tpu.memory_space<vmem>>, vector<1x16x32xf32>,
    return
  }
  func.func @transform_0(%arg0: i32, %arg1: i32) -> (i32, i32, i32) {
    %c0_i32 = arith.constant 0 : i32
    %c0_i32_0 = arith.constant 0 : i32
    return %arg0, %arg1, %c0_i32 : i32, i32, i32
  }
  func.func @transform_1(%arg0: i32, %arg1: i32) -> (i32, i32, i32) {
    %c0_i32 = arith.constant 0 : i32
    %c0_i32_0 = arith.constant 0 : i32
    %c0_i32_1 = arith.constant 0 : i32
    %c0_i32_2 = arith.constant 0 : i32
    return %c0_i32, %c0_i32_0, %c0_i32_1 : i32, i32, i32
  }
  func.func @transform_2(%arg0: i32, %arg1: i32) -> (i32, i32, i32) {
    %c0_i32 = arith.constant 0 : i32
    %c0_i32_0 = arith.constant 0 : i32
    %c0_i32_1 = arith.constant 0 : i32
    %c0_i32_2 = arith.constant 0 : i32
    return %c0_i32, %c0_i32_0, %c0_i32_1 : i32, i32, i32
  }
  func.func @transform_3(%arg0: i32, %arg1: i32) -> (i32, i32, i32) {
    %c0_i32 = arith.constant 0 : i32
    %c0_i32_0 = arith.constant 0 : i32
    return %arg0, %arg1, %c0_i32 : i32, i32, i32
  }
}

</mosaic_0001>

<bundles_post_ra>
// kernel: tpu_custom_call.1
= control target key start
LH: loop header
LB: loop body
LE: loop exit
PB: predicated region body
PF: predicated region fallthrough
CT: control target
= control target key end

     0   :  { %8 = vsyncpa [#allocation3], 0  ;;  %s701_s0 = inlined_call_operand.vmem [shape: f32[2,16,32], index: 0, kind: input, shape index: {}]   ;;  %s702_s1 = inlined_call_operand.vmem [shape: f32[1,32,8], index: 1, kind: input, shape index: {}]   ;;  %s703_s2 = inlined_call_operand.vmem [shape: f32[1,8,32], index: 2, kind: input, shape index: {}]   ;;  %s704_s3 = inlined_call_operand.hbm [shape: f32[2,16,32], index: 3, kind: output, shape index: {}]  }
   0x1   :  { %10 = vsyncpa [#allocation3 + $0x1], 0  ;;  %s579_s12 = smov 0   ;;  %s581_s13 = smov 0  }
   0x2   :  { %s583_s14 = smov 0   ;;  %s585_s15 = smov 0  }
   0x3   :  { %s587_s16 = smov 0   ;;  %s589_s17 = smov 0  }
   0x4 LB: > { %s388_s18 = sadd.s32 4294967295, %s555_s17   ;;  %s389_s19 = sadd.s32 4294967294, %s555_s17   ;;  %s555_s17 = sphi %s589_s17, %s16_s17   ;;  %s551_s16 = sphi %s587_s16, %s711_s16   ;;  %s547_s15 = sphi %s585_s15, %s710_s15   ;;  %s543_s14 = sphi %s583_s14, %s709_s14   ;;  %s539_s13 = sphi %s581_s13, %s708_s13   ;;  %s535_s12 = sphi %s579_s12, %s707_s12  }
   0x5   : > { %s28_s20 = sadd.s32 1, %s551_s16  ;;  %s107_s21 = sadd.s32 1, %s543_s14 }
   0x6   : > { %p30_p0 = scmp.ge.s32.totalorder %s28_s20, 2  ;;  %p117_p1 = scmp.ne.s32.totalorder %s543_s14, %s539_s13 }
   0x7   : > { %p118_p2 = scmp.eq.s32.totalorder %s388_s18, 1  ;;  %p123_p3 = scmp.ne.s32.totalorder %s539_s13, %s535_s12 }
   0x8   : > { %s713_s20 = smov (%p30_p0, %s28_s20), 0  ;;  %p124_p5 = scmp.eq.s32.totalorder %s389_s19, 1 }
   0x9   : > { %p619_p4 = por %p118_p2, %p117_p1  ;;  %s102_s23 = ssub.s32 %s551_s16, %s713_s20 }
   0xa   : > { %p392_p6 = scmp.ge.s32.totalorder %s555_s17, 1  ;;  %p105_p7 = scmp.eq.s32.totalorder %s102_s23, 0 }
   0xb   : > { %p626_p8 = por %p124_p5, %p123_p3  ;;  %p161_p9 = scmp.lt.s32.totalorder %s555_s17, 3 }
   0xc   : > { %s632_s25 = scalar_select %p105_p7, %s543_s14, %s107_s21  }
   0xd   : > { %p162_p10 = pnand %p392_p6, %p161_p9 }
   0xe   : > { %p190_p11 = scmp.lt.s32.totalorder (!%p162_p10), %s547_s15, 1  ;;  %s186_s21 = sand.u32 (!%p162_p10), 1, %s539_s13  }
   0xf   : > { %165 = sbr.rel (%p162_p10) target bundleno = 552 (0x228), region = 32  ;;  %s393_s23 = sshll.u32 (!%p162_p10), %s186_s21, 4 }
  0x10   : > { %s406_s26 = sshll.u32 (!%p162_p10), %s547_s15, 4  ;;  %s188_s30 = scalar_lea.vmem (!%p162_p10), [#allocation2], %s393_s23 }
  0x11   : > { %s305_s29 = scalar_lea.hbm (!%p162_p10), %s704_s3, %s406_s26  ;;  %s306_s4 = sshll.u32 (!%p162_p10), %s188_s30, 4  ;;  %s307_s4 = int_to_ptr.vmem [resolvable:$true] %s306_s4 }
  0x12   : > { %s292_s6 = scalar_lea.sflag (!%p162_p10), [#allocation3], %s186_s21  ;;  %s497_s10 = scalar_lea.hbm (!%p162_p10), %s704_s3, 32 }
  0x14   : > { %v205_v0 = vld [vmem:[%s702_s1 + $0x18] sm:$0xff]  ;;  %v204_v1 = vld [vmem:[%s702_s1 + $0x10] sm:$0xff]  ;;  %v203_v2 = vld [vmem:[%s702_s1 + $0x8] sm:$0xff]  ;;  %s191_s5 = scalar_select %p190_p11, %s547_s15, 1  ;;  %vm207_vm0 = vcmask 261120   ;;  %vm237_vm1 = vcmask 64512  }
  0x15   : > { %407 = vmatpush.msra.mxu2 %v205_v0  ;;  %226 = vmatpush.msra.mxu0 %v205_v0  ;;  %v202_v3 = vld [vmem:[%s702_s1] sm:$0xff] }
  0x16   : > { %s405_s8 = sshll.u32 %s191_s5, 4  ;;  %v206_v20 = vld [vmem:[%s703_s2] sm:$0xff]  ;;  %s308_s5 = sshll.u32 %s305_s29, 4  ;;  %s309_s5 = int_to_ptr.hbm [resolvable:$true] %s308_s5 }
  0x17   : > { %408 = vmatpush.msra.mxu2 %v204_v1  ;;  %227 = vmatpush.msra.mxu0 %v204_v1  ;;  %s197_s11 = scalar_lea.vmem %s701_s0, %s405_s8  ;;  %s491_s7 = sshra.s32 %s309_s5, 4  ;;  %s492_s7 = int_to_ptr.hbm [resolvable:$true] %s491_s7 }
  0x18   : > { %v201_v4 = vld [vmem:[%s197_s11 + $0x8] sm:$0xff]  ;;  %v200_v5 = vld [vmem:[%s197_s11] sm:$0xff]  ;;  %411 = vmatpush.msra.mxu3 %v206_v20  ;;  %281 = vmatpush.msra.mxu1 %v206_v20  ;;  %s493_s15 = scalar_lea.hbm %s492_s7, 16  ;;  %p498_p1 = scmp.lt.s32.totalorder %s492_s7, %s704_s3 }
  0x19   : > { %409 = vmatpush.msra.mxu2 %v203_v2  ;;  %228 = vmatpush.msra.mxu0 %v203_v2  ;;  %p494_p12 = scmp.ne.s32.totalorder %s492_s7, %s493_s15  ;;  %p499_p2 = scmp.lt.s32.totalorder %s497_s10, %s493_s15 }
  0x1b   : > { %410 = vmatpush.msra.mxu2 %v202_v3  ;;  %229 = vmatpush.msra.mxu0 %v202_v3  ;;  %p495_p13 = pnand %p494_p12, %p619_p4  ;;  %p500_p3 = por %p499_p2, %p498_p1 }
  0x1c   : > { %397 = vmatmul.msk.f32.vlgmr.msra.gmra.mxu2 %vm207_vm0, %v201_v4  ;;  %396 = vmatmul.msk.f32.vlgmr.msra.gmra.mxu0 %vm207_vm0, %v200_v5 }
  0x1d   : > { %p496_p0 = pneg %p495_p13 }
  0x1f   : > { %p501_p5 = pnand %p500_p3, %p496_p0 }
  0x99   : > { %v231_v8 = vpop.f32.mrf.mxu0 }
  0x9a   : > { %v238_v9 = vsel %vm237_vm1, %v231_v8, -inf }
  0x9f   : > { %v234_v6 = vpop.f32.mrf.mxu2 }
  0xa0   : > { %v241_v7 = vsel %vm237_vm1, %v234_v6, -inf }
  0xa1   : > { %242 = vmax.xlane.f32.xlu0 %v241_v7 }
  0xa9   : > { %239 = vmax.xlane.f32.xlu0 %v238_v9 }
 0x114   : > { %v243_v10 = vpop.xlane.xlu0 %242 }
 0x115   : > { %v245_v11 = vsub.f32 %v234_v6, %v243_v10 }
 0x117   : > { %v248_v12 = vmul.f32 1.442695, %v245_v11 }
 0x119   : > { %469 = vpow2.f32 %v248_v12 }
 0x11c   : > { %v240_v13 = vpop.xlane.xlu0 %239 }
 0x11d   : > { %v244_v14 = vsub.f32 %v231_v8, %v240_v13 }
 0x11f   : > { %v470_v15 = vpop.eup %469  ;;  %v246_v16 = vmul.f32 1.442695, %v244_v14 }
 0x120   : > { %v253_v17 = vsel %vm237_vm1, %v470_v15, 0.0 }
 0x121   : > { %471 = vpow2.f32 %v246_v16  ;;  %254 = vadd.xlane.f32.xlu1 %v253_v17 }
 0x127   : > { %v472_v18 = vpop.eup %471 }
 0x128   : > { %v250_v19 = vsel %vm237_vm1, %v472_v18, 0.0 }
 0x129   : > { %251 = vadd.xlane.f32.xlu1 %v250_v19 }
 0x194   : > { %v255_v21 = vpop.xlane.xlu1 %254 }
 0x195   : > { %473 = vrcp.f32 %v255_v21 }
 0x19b   : > { %v474_v22 = vpop.eup %473 }
 0x19c   : > { %v252_v23 = vpop.xlane.xlu1 %251  ;;  %v259_v24 = vmul.f32 %v474_v22, %v470_v15 }
 0x19d   : > { %475 = vrcp.f32 %v252_v23 }
 0x19e   : > { %399 = vmatmul.msk.f32.vlgmr.msra.gmra.mxu3 %vm237_vm1, %v259_v24 }
 0x1a3   : > { %v476_v25 = vpop.eup %475 }
 0x1a4   : > { %v258_v26 = vmul.f32 %v476_v25, %v472_v18 }
 0x1a6   : > { %398 = vmatmul.msk.f32.vlgmr.msra.gmra.mxu1 %vm237_vm1, %v258_v26 }
 0x221   : > { %v286_v27 = vpop.f32.mrf.mxu3 }
 0x222   : > { %290 = vst.msk [vmem:[%s188_s30 + $0x8] sm:$0xff] %vm207_vm0, %v286_v27 }
 0x223   : > { %v283_v28 = vpop.f32.mrf.mxu1 }
 0x224   : > { %289 = vst.msk [vmem:[%s188_s30] sm:$0xff] %vm207_vm0, %v283_v28 }
 0x225   : > { %504 = shalt.err (!%p501_p5)
}
 0x226   : > { %s557_s19 = smov 128   ;;  %s558_s21 = smov 8  }
 0x227   : > { %412 = dma.vmem_to_hbm [thread:$0]  (%p619_p4), %s307_s4, 256, %s309_s5, %s292_s6, %s557_s19, %s557_s19, %s558_s21  }
 0x228 PF: > { %p418_p6 = scmp.ge.s32.totalorder %s555_s17, 2  ;;  %s323_s23 = sand.u32 1, %s535_s12  }
 0x229   : > { %s324_s26 = scalar_lea.sflag [#allocation3], %s323_s23 }
 0x22a   : > { %p415_p7 = pnand %p418_p6, %p626_p8 }
 0x22c   : > { %p416_p9 = pneg %p415_p7 }
 0x22e   : > { %530 = dma.done.wait (%p416_p9), %s324_s26, 256  }
 0x22f   : > { %532 = vsyncadd (%p416_p9), %s324_s26, 4294967040  ;;  %s16_s17 = sadd.s32 1, %s555_s17   ;;  %s707_s12 = smov %s539_s13 }
 0x230   : > { %p13_p10 = scmp.ge.s32.totalorder %s16_s17, 4   ;;  %s708_s13 = smov %s543_s14 }
 0x231   : > { %s709_s14 = smov %s632_s25  ;;  %s710_s15 = smov %s551_s16 }
 0x232   : > { %s711_s16 = smov %s713_s20  ;;  %15 = sbr.rel (!%p13_p10) target bundleno = 4 (0x4), region = 67 }
 0x237   :  { %330 = vsyncpa [#allocation3], 1 }
 0x238   :  { %332 = vsyncpa [#allocation3 + $0x1], 1 }

</bundles_post_ra>
